<compile_context>
chip_gen: v7x
topology: tpu7x:2x2x1
jax: 0.10.0
libtpu: 0.0.40
codegen_flags: <defaults>
</compile_context>

<pallas_src>
import jax
import jax.numpy as jnp
from jax.experimental import pallas as pl
from jax.experimental.pallas import tpu as pltpu

BN_EPS = 1e-5


def se_block_kernel(x_ref, w1_ref, b1_ref, w2_ref, b2_ref, o_ref):
    # x_ref: (Nb, C, T)   w1_ref: (C, B)   w2_ref: (B, C) (BN pre-folded)
    # b1_ref: (1, B)      b2_ref: (1, C)   (BN pre-folded)

    # AdaptiveAvgPool1d(1): mean over time, accumulated in f32.
    pooled = jnp.mean(x_ref[...].astype(jnp.float32), axis=-1)          # (Nb, C)

    # Conv1d(C -> B, k=1) + ReLU.
    h = jnp.dot(pooled, w1_ref[...],
                preferred_element_type=jnp.float32) + b1_ref[...]       # (Nb, B)
    h = jnp.maximum(h, 0.0)

    # BN-folded Conv1d(B -> C, k=1) + Sigmoid.
    s = jnp.dot(h, w2_ref[...],
                preferred_element_type=jnp.float32) + b2_ref[...]       # (Nb, C)
    s = jax.nn.sigmoid(s)

    # Scale: re-read the x tile (native dtype) and broadcast s over T.
    x = x_ref[...]
    o_ref[...] = (x * s.astype(x.dtype)[:, :, None]).astype(o_ref.dtype)


def _choose_batch_tile(n, c, t, itemsize, budget_bytes=4 * 1024 * 1024):
    """Largest divisor of n whose (nb, C, T) tile stays under the byte budget."""
    per_sample = max(1, c * t * itemsize)
    max_nb = max(1, budget_bytes // per_sample)
    nb = 1
    for d in range(1, n + 1):
        if n % d == 0 and d <= max_nb:
            nb = d
    return nb


def se_block(x, w1, b1, gamma, beta, rm, rv, w2, b2):
    """x: (N, C, T); w1: (bottleneck, C); w2: (C, bottleneck); rest are 1-D params."""
    N, C, T = x.shape
    B = w1.shape[0]
    f32 = jnp.float32

    # Pre-transpose conv weights to (in, out) so the kernel does plain row-major dots.
    w1_t = jnp.transpose(w1).astype(f32)                                  # (C, B)
    w2_t = jnp.transpose(w2).astype(f32)                                  # (B, C)

    # Fold inference BatchNorm into the second conv:
    #   bn(h) @ w2_t + b2 = h @ (scale[:,None] * w2_t) + ((beta - rm*scale) @ w2_t + b2)
    scale = gamma.astype(f32) * jax.lax.rsqrt(rv.astype(f32) + BN_EPS)    # (B,)
    w2_f = scale[:, None] * w2_t                                          # (B, C)
    b2_f = (beta.astype(f32) - rm.astype(f32) * scale) @ w2_t + b2.astype(f32)

    b1_r = b1.astype(f32).reshape(1, B)
    b2_r = b2_f.reshape(1, C)

    nb = _choose_batch_tile(N, C, T, x.dtype.itemsize)
    grid = (N // nb,)

    return pl.pallas_call(
        se_block_kernel,
        out_shape=jax.ShapeDtypeStruct((N, C, T), x.dtype),
        grid=grid,
        in_specs=[
            pl.BlockSpec((nb, C, T), lambda i: (i, 0, 0)),   # x (streamed, native dtype)
            pl.BlockSpec((C, B), lambda i: (0, 0)),          # w1^T
            pl.BlockSpec((1, B), lambda i: (0, 0)),          # b1
            pl.BlockSpec((B, C), lambda i: (0, 0)),          # BN-folded w2^T
            pl.BlockSpec((1, C), lambda i: (0, 0)),          # BN-folded b2
        ],
        out_specs=pl.BlockSpec((nb, C, T), lambda i: (i, 0, 0)),
        compiler_params=pltpu.CompilerParams(
            dimension_semantics=("parallel",),
            vmem_limit_bytes=64 * 1024 * 1024,
        ),
    )(x, w1_t, b1_r, w2_f, b2_r)


def se_block_ref(x, w1, b1, gamma, beta, rm, rv, w2, b2):
    """Pure-JAX reference (un-folded BN) for sanity checking."""
    pooled = jnp.mean(x, axis=-1)                       # (N, C)
    h = jnp.maximum(pooled @ w1.T + b1, 0.0)
    h = (h - rm) / jnp.sqrt(rv + BN_EPS) * gamma + beta
    s = jax.nn.sigmoid(h @ w2.T + b2)
    return x * s[:, :, None]


if __name__ == "__main__":
    N, C, T = 2, 16, 16      # batch, channels, time
    BOTTLENECK = 32

    key = jax.random.PRNGKey(0)
    ks = jax.random.split(key, 8)

    x = jax.random.normal(ks[0], (N, C, T), dtype=jnp.float32)

    # Deterministic parameter init (synthetic, no checkpoint load).
    w1 = jax.random.normal(ks[1], (BOTTLENECK, C), dtype=jnp.float32) * 0.1
    b1 = jax.random.normal(ks[2], (BOTTLENECK,), dtype=jnp.float32) * 0.1
    gamma = jnp.ones((BOTTLENECK,), jnp.float32) + 0.05 * jax.random.normal(
        ks[3], (BOTTLENECK,), dtype=jnp.float32)
    beta = 0.1 * jax.random.normal(ks[4], (BOTTLENECK,), dtype=jnp.float32)
    rm = 0.1 * jax.random.normal(ks[5], (BOTTLENECK,), dtype=jnp.float32)
    rv = jnp.abs(1.0 + 0.1 * jax.random.normal(ks[6], (BOTTLENECK,),
                                               dtype=jnp.float32))
    w2 = jax.random.normal(ks[7], (C, BOTTLENECK), dtype=jnp.float32) * 0.1
    b2 = jnp.zeros((C,), jnp.float32)

    out = se_block(x, w1, b1, gamma, beta, rm, rv, w2, b2)
    out = jax.block_until_ready(out)

    ref = se_block_ref(x, w1, b1, gamma, beta, rm, rv, w2, b2)
    assert out.shape == (N, C, T)
    assert jnp.allclose(out, ref, atol=1e-5, rtol=1e-5)

    print("KERNEL_OK")
</pallas_src>

<mosaic_0001>
module attributes {stable_mosaic.version = 11 : i64} {
  func.func @se_block_kernel(%arg0: i32, %arg1: memref<2x16x16xf32, #tpu.memory_space<vmem>>, %arg2: memref<16x32xf32, #tpu.memory_space<vmem>>, %arg3: memref<1x32xf32, #tpu.memory_space<vmem>>, %arg4: memref<32x16xf32, #tpu.memory_space<vmem>>, %arg5: memref<1x16xf32, #tpu.memory_space<vmem>>, %arg6: memref<2x16x16xf32, #tpu.memory_space<vmem>>) attributes {dimension_semantics = [#tpu.dimension_semantics<parallel>], iteration_bounds = array<i64: 1>, scalar_prefetch = 0 : i64, scratch_operands = 0 : i64, tpu.core_type = #tpu.core_type<tc>, window_params = [{transform_indices = @transform_0, window_bounds = array<i64: 2, 16, 16>}, {pipeline_mode = #tpu.pipeline_mode<synchronous>, transform_indices = @transform_1, window_bounds = array<i64: 16, 32>}, {pipeline_mode = #tpu.pipeline_mode<synchronous>, transform_indices = @transform_2, window_bounds = array<i64: 1, 32>}, {pipeline_mode = #tpu.pipeline_mode<synchronous>, transform_indices = @transform_3, window_bounds = array<i64: 32, 16>}, {pipeline_mode = #tpu.pipeline_mode<synchronous>, transform_indices = @transform_4, window_bounds = array<i64: 1, 16>}, {transform_indices = @transform_5, window_bounds = array<i64: 2, 16, 16>}]} {
    %c0 = arith.constant 0 : index
    %c0_0 = arith.constant 0 : index
    %c0_1 = arith.constant 0 : index
    %0 = vector.load %arg1[%c0, %c0_0, %c0_1] : memref<2x16x16xf32, #tpu.memory_space<vmem>>, vector<2x16x16xf32>
    %cst = arith.constant dense<0.000000e+00> : vector<2x16xf32>
    %1 = vector.multi_reduction <add>, %0, %cst [2] : vector<2x16x16xf32> to vector<2x16xf32>
    %cst_2 = arith.constant 1.600000e+01 : f32
    %2 = vector.broadcast %cst_2 : f32 to vector<2x16xf32>
    %3 = arith.divf %1, %2 : vector<2x16xf32>
    %c0_3 = arith.constant 0 : index
    %c0_4 = arith.constant 0 : index
    %4 = vector.load %arg2[%c0_3, %c0_4] : memref<16x32xf32, #tpu.memory_space<vmem>>, vector<16x32xf32>
    %cst_5 = arith.constant dense<0.000000e+00> : vector<2x32xf32>
    %5 = tpu.matmul %3, %4, %cst_5 {dimension_numbers = #tpu.dot_dimension_numbers<[1], [0], [0], [1], [0, 0, 1, 1], [], []>} : vector<2x16xf32>, vector<16x32xf32>, vector<2x32xf32> -> vector<2x32xf32>
    %c0_6 = arith.constant 0 : index
    %c0_7 = arith.constant 0 : index
    %6 = vector.load %arg3[%c0_6, %c0_7] : memref<1x32xf32, #tpu.memory_space<vmem>>, vector<1x32xf32>
    %7 = vector.broadcast %6 : vector<1x32xf32> to vector<2x32xf32>
    %8 = arith.addf %5, %7 : vector<2x32xf32>
    %cst_8 = arith.constant 0.000000e+00 : f32
    %9 = vector.broadcast %cst_8 : f32 to vector<2x32xf32>
    %10 = arith.maximumf %8, %9 : vector<2x32xf32>
    %c0_9 = arith.constant 0 : index
    %c0_10 = arith.constant 0 : index
    %11 = vector.load %arg4[%c0_9, %c0_10] : memref<32x16xf32, #tpu.memory_space<vmem>>, vector<32x16xf32>
    %cst_11 = arith.constant dense<0.000000e+00> : vector<2x16xf32>
    %12 = tpu.matmul %10, %11, %cst_11 {dimension_numbers = #tpu.dot_dimension_numbers<[1], [0], [0], [1], [0, 0, 1, 1], [], []>} : vector<2x32xf32>, vector<32x16xf32>, vector<2x16xf32> -> vector<2x16xf32>
    %c0_12 = arith.constant 0 : index
    %c0_13 = arith.constant 0 : index
    %13 = vector.load %arg5[%c0_12, %c0_13] : memref<1x16xf32, #tpu.memory_space<vmem>>, vector<1x16xf32>
    %14 = vector.broadcast %13 : vector<1x16xf32> to vector<2x16xf32>
    %15 = arith.addf %12, %14 : vector<2x16xf32>
    %16 = arith.negf %15 : vector<2x16xf32>
    %17 = math.exp %16 : vector<2x16xf32>
    %cst_14 = arith.constant 1.000000e+00 : f32
    %18 = vector.broadcast %cst_14 : f32 to vector<2x16xf32>
    %19 = arith.addf %18, %17 : vector<2x16xf32>
    %20 = arith.divf %18, %19 : vector<2x16xf32>
    %c0_15 = arith.constant 0 : index
    %c0_16 = arith.constant 0 : index
    %c0_17 = arith.constant 0 : index
    %21 = vector.load %arg1[%c0_15, %c0_16, %c0_17] : memref<2x16x16xf32, #tpu.memory_space<vmem>>, vector<2x16x16xf32>
    %22 = vector.shape_cast %20 : vector<2x16xf32> to vector<2x16x1xf32>
    %23 = vector.broadcast %22 : vector<2x16x1xf32> to vector<2x16x16xf32>
    %24 = arith.mulf %21, %23 : vector<2x16x16xf32>
    %c0_18 = arith.constant 0 : index
    %c0_19 = arith.constant 0 : index
    %c0_20 = arith.constant 0 : index
    %25 = vector.load %arg6[%c0_18, %c0_19, %c0_20] : memref<2x16x16xf32, #tpu.memory_space<vmem>>, vector<2x16x16xf32>
    tpu.vector_store %arg6[%c0_18, %c0_19, %c0_20], %24 {strides = array<i32>} : memref<2x16x16xf32, #tpu.memory_space<vmem>>, vector<2x16x16xf32>,
    return
  }
  func.func @transform_0(%arg0: i32) -> (i32, i32, i32) {
    %c0_i32 = arith.constant 0 : i32
    %c0_i32_0 = arith.constant 0 : i32
    %c0_i32_1 = arith.constant 0 : i32
    return %arg0, %c0_i32, %c0_i32_0 : i32, i32, i32
  }
  func.func @transform_1(%arg0: i32) -> (i32, i32) {
    %c0_i32 = arith.constant 0 : i32
    %c0_i32_0 = arith.constant 0 : i32
    %c0_i32_1 = arith.constant 0 : i32
    return %c0_i32, %c0_i32_0 : i32, i32
  }
  func.func @transform_2(%arg0: i32) -> (i32, i32) {
    %c0_i32 = arith.constant 0 : i32
    %c0_i32_0 = arith.constant 0 : i32
    %c0_i32_1 = arith.constant 0 : i32
    return %c0_i32, %c0_i32_0 : i32, i32
  }
  func.func @transform_3(%arg0: i32) -> (i32, i32) {
    %c0_i32 = arith.constant 0 : i32
    %c0_i32_0 = arith.constant 0 : i32
    %c0_i32_1 = arith.constant 0 : i32
    return %c0_i32, %c0_i32_0 : i32, i32
  }
  func.func @transform_4(%arg0: i32) -> (i32, i32) {
    %c0_i32 = arith.constant 0 : i32
    %c0_i32_0 = arith.constant 0 : i32
    %c0_i32_1 = arith.constant 0 : i32
    return %c0_i32, %c0_i32_0 : i32, i32
  }
  func.func @transform_5(%arg0: i32) -> (i32, i32, i32) {
    %c0_i32 = arith.constant 0 : i32
    %c0_i32_0 = arith.constant 0 : i32
    %c0_i32_1 = arith.constant 0 : i32
    return %arg0, %c0_i32, %c0_i32_0 : i32, i32, i32
  }
}

</mosaic_0001>

<bundles_post_ra>
// kernel: tpu_custom_call.1
= control target key start
LH: loop header
LB: loop body
LE: loop exit
PB: predicated region body
PF: predicated region fallthrough
CT: control target
= control target key end

     0   :  { %10 = vsyncpa [#allocation3], 0  ;;  %s709_s0 = inlined_call_operand.hbm [shape: f32[2,16,16], index: 0, kind: input, shape index: {}]   ;;  %s710_s1 = inlined_call_operand.hbm [shape: f32[16,32], index: 1, kind: input, shape index: {}]   ;;  %s711_s2 = inlined_call_operand.hbm [shape: f32[1,32], index: 2, kind: input, shape index: {}]   ;;  %s712_s3 = inlined_call_operand.hbm [shape: f32[32,16], index: 3, kind: input, shape index: {}]   ;;  %s713_s4 = inlined_call_operand.hbm [shape: f32[1,16], index: 4, kind: input, shape index: {}]   ;;  %s714_s5 = inlined_call_operand.hbm [shape: f32[2,16,16], index: 5, kind: output, shape index: {}]  }
   0x1   :  { %11 = vsyncpa [#allocation6], 0 }
   0x2   :  { %12 = vsyncpa [#allocation9], 0 }
   0x3   :  { %13 = vsyncpa [#allocation4], 0  ;;  %s552_s18 = smov [#allocation5]   ;;  %s553_s20 = smov [#allocation8]  }
   0x4   :  { %s31_s19 = sshll.u32 %s552_s18, 4  ;;  %s53_s21 = sshll.u32 %s553_s20, 4  ;;  %s32_s19 = int_to_ptr.vmem [resolvable:$true] %s31_s19  ;;  %s593_s21 = int_to_ptr.vmem [resolvable:$true] %s53_s21 }
   0x5   :  { %s412_s24 = scalar_lea.hbm %s710_s1, 256 }
   0x6   :  { %p413_p0 = scmp.ne.s32.totalorder %s710_s1, %s412_s24  ;;  %p416_p1 = scmp.lt.u32.totalorder %s412_s24, %s710_s1 }
   0x8   :  { %p418_p2 = pnand %p416_p1, %p413_p0 }
   0xa   :  { %421 = shalt.err (!%p418_p2)
}
   0xb   :  { %s422_s29 = scalar_lea.vmem %s32_s19, 256  ;;  %p427_p4 = scmp.lt.s32.totalorder %s32_s19, %s32_s19 }
   0xc   :  { %p423_p3 = scmp.ne.s32.totalorder %s32_s19, %s422_s29  ;;  %p428_p5 = scmp.lt.s32.totalorder %s422_s29, %s422_s29 }
   0xe   :  { %p429_p6 = por %p428_p5, %p427_p4 }
  0x10   :  { %p430_p7 = pnand %p429_p6, %p423_p3 }
  0x12   :  { %433 = shalt.err (!%p430_p7)
}
  0x13   :  { %s554_s30 = smov 128   ;;  %s555_s6 = smov 8  }
  0x14   :  { %37 = dma.hbm_to_vmem [thread:$0]  %s710_s1, 256, %s32_s19, [#allocation6], %s554_s30, %s554_s30, %s555_s6  }
  0x15   :  { %s434_s11 = scalar_lea.hbm %s712_s3, 512 }
  0x16   :  { %p435_p8 = scmp.ne.s32.totalorder %s712_s3, %s434_s11  ;;  %p438_p9 = scmp.lt.u32.totalorder %s434_s11, %s712_s3 }
  0x18   :  { %p440_p10 = pnand %p438_p9, %p435_p8 }
  0x1a   :  { %443 = shalt.err (!%p440_p10)
}
  0x1b   :  { %s444_s16 = scalar_lea.vmem %s593_s21, 512  ;;  %p449_p12 = scmp.lt.s32.totalorder %s593_s21, %s593_s21 }
  0x1c   :  { %p445_p11 = scmp.ne.s32.totalorder %s593_s21, %s444_s16  ;;  %p450_p13 = scmp.lt.s32.totalorder %s444_s16, %s444_s16 }
  0x1e   :  { %p451_p0 = por %p450_p13, %p449_p12 }
  0x20   :  { %p452_p1 = pnand %p451_p0, %p445_p11 }
  0x22   :  { %455 = shalt.err (!%p452_p1)
}
  0x23   :  { %59 = dma.hbm_to_vmem [thread:$0]  %s712_s3, 512, %s593_s21, [#allocation9], %s554_s30, %s554_s30, %s555_s6  }
  0x24   :  { %s556_s18 = smov [#allocation2]   ;;  %s557_s20 = smov [#allocation7]  }
  0x25   :  { %s19_s19 = sshll.u32 %s556_s18, 4  ;;  %s44_s22 = sshll.u32 %s557_s20, 4  ;;  %s20_s19 = int_to_ptr.vmem [resolvable:$true] %s19_s19  ;;  %s45_s22 = int_to_ptr.vmem [resolvable:$true] %s44_s22 }
  0x26   :  { %s456_s25 = scalar_lea.hbm %s709_s0, 512 }
  0x27   :  { %p457_p2 = scmp.ne.s32.totalorder %s709_s0, %s456_s25  ;;  %p460_p3 = scmp.lt.u32.totalorder %s456_s25, %s709_s0 }
  0x29   :  { %p462_p4 = pnand %p460_p3, %p457_p2 }
  0x2b   :  { %465 = shalt.err (!%p462_p4)
}
  0x2c   :  { %s466_s3 = scalar_lea.vmem %s20_s19, 512  ;;  %p471_p6 = scmp.lt.s32.totalorder %s20_s19, %s20_s19 }
  0x2d   :  { %p467_p5 = scmp.ne.s32.totalorder %s20_s19, %s466_s3  ;;  %p472_p7 = scmp.lt.s32.totalorder %s466_s3, %s466_s3 }
  0x2f   :  { %p473_p8 = por %p472_p7, %p471_p6 }
  0x31   :  { %p474_p9 = pnand %p473_p8, %p467_p5 }
  0x33   :  { %477 = shalt.err (!%p474_p9)
}
  0x34   :  { %25 = dma.hbm_to_vmem [thread:$0]  %s709_s0, 512, %s20_s19, [#allocation3], %s554_s30, %s554_s30, %s555_s6  }
  0x35   :  { %s478_s10 = scalar_lea.hbm %s711_s2, 16 }
  0x36   :  { %p479_p10 = scmp.ne.s32.totalorder %s711_s2, %s478_s10  ;;  %p482_p11 = scmp.lt.u32.totalorder %s478_s10, %s711_s2 }
  0x38   :  { %p484_p12 = pnand %p482_p11, %p479_p10 }
  0x3a   :  { %487 = shalt.err (!%p484_p12)
}
  0x3b   :  { %s488_s15 = scalar_lea.vmem %s45_s22, 16  ;;  %s492_s16 = scalar_lea.vmem %s45_s22, 32 }
  0x3c   :  { %p489_p13 = scmp.ne.s32.totalorder %s45_s22, %s488_s15  ;;  %p493_p0 = scmp.lt.s32.totalorder %s45_s22, %s45_s22 }
  0x3d   :  { %p494_p1 = scmp.lt.s32.totalorder %s492_s16, %s488_s15 }
  0x3f   :  { %p495_p2 = por %p494_p1, %p493_p0 }
  0x41   :  { %p496_p3 = pnand %p495_p2, %p489_p13 }
  0x43   :  { %499 = shalt.err (!%p496_p3)
}
  0x44   :  { %47 = dma.hbm_to_vmem [thread:$0]  %s711_s2, 16, %s45_s22, [#allocation6]  }
  0x45   :  { %s558_s17 = smov [#allocation10]   ;;  %s500_s23 = scalar_lea.hbm %s713_s4, 16 }
  0x46   :  { %s66_s18 = sshll.u32 %s558_s17, 4  ;;  %p501_p4 = scmp.ne.s32.totalorder %s713_s4, %s500_s23  ;;  %s67_s18 = int_to_ptr.vmem [resolvable:$true] %s66_s18 }
  0x47   :  { %p504_p5 = scmp.lt.u32.totalorder %s500_s23, %s713_s4 }
  0x49   :  { %p506_p6 = pnand %p504_p5, %p501_p4 }
  0x4b   :  { %509 = shalt.err (!%p506_p6)
}
  0x4c   :  { %s510_s28 = scalar_lea.vmem %s67_s18, 16  ;;  %s514_s2 = scalar_lea.vmem %s67_s18, 32 }
  0x4d   :  { %p511_p7 = scmp.ne.s32.totalorder %s67_s18, %s510_s28  ;;  %p515_p8 = scmp.lt.s32.totalorder %s67_s18, %s67_s18 }
  0x4e   :  { %p516_p9 = scmp.lt.s32.totalorder %s514_s2, %s510_s28 }
  0x50   :  { %p517_p10 = por %p516_p9, %p515_p8 }
  0x52   :  { %p518_p11 = pnand %p517_p10, %p511_p7 }
  0x54   :  { %521 = shalt.err (!%p518_p11)
}
  0x55   :  { %69 = dma.hbm_to_vmem [thread:$0]  %s713_s4, 16, %s67_s18, [#allocation9]  }
  0x56   :  { %544 = dma.done.wait [#allocation3], 512  }
  0x57   :  { %545 = vsyncadd [#allocation3], 4294966784 }
  0x58   :  { %546 = dma.done.wait [#allocation6], 272  }
  0x59   :  { %547 = vsyncadd [#allocation6], 4294967024 }
  0x5a   :  { %548 = dma.done.wait [#allocation9], 528  }
  0x5b   :  { %549 = vsyncadd [#allocation9], 4294966768  ;;  %vm89_vm0 = vcmask 130048   ;;  %v669_v0 = vld [vmem:[#allocation2 + $0x10] sm:$0xff]  ;;  %v671_v1 = vld [vmem:[#allocation2] sm:$0xff]  ;;  %v559_v11 = vmov 0.0|0.0   ;;  %v120_v16 = vlaneseq }
  0x5c   :  { %v673_v2 = vld [vmem:[#allocation2 + $0x18] sm:$0xff]  ;;  %v96_v3 = vsel %vm89_vm0, %v669_v0, 0.0  ;;  %v90_v4 = vsel %vm89_vm0, %v671_v1, 0.0  ;;  %v679_v5 = vld [vmem:[#allocation2 + $0x8] sm:$0xff]  ;;  %v107_v8 = vld [vmem:[#allocation5] sm:$0xff]  ;;  %388 = vmatprep.subr.bf16.mxu0 %v559_v11  ;;  %391 = vmatprep.subr.bf16.mxu1 %v559_v11  ;;  %vm560_vm1 = vmmov 0  }
  0x5d   :  { %97 = vadd.xlane.f32.xlu1 %v96_v3  ;;  %91 = vadd.xlane.f32.xlu0 %v90_v4  ;;  %v99_v6 = vsel %vm89_vm0, %v673_v2, 0.0  ;;  %v93_v7 = vsel %vm89_vm0, %v679_v5, 0.0  ;;  %v108_v9 = vld [vmem:[#allocation5 + $0x8] sm:$0xff]  ;;  %v561_v12 = vmov 0.0   ;;  %v217_v13 = vld [vmem:[#allocation8] sm:$0xff]  ;;  %v218_v14 = vld [vmem:[#allocation8 + $0x8] sm:$0xff] }
  0x5e   :  { %v389_v10 = vpack.c.bf16 %v108_v9, %v107_v8  ;;  %374 = vmatprep.mubr.msk.f32.mxu0 %vm560_vm1, %v561_v12  ;;  %385 = vmatprep.mubr.msk.f32.mxu1 %vm560_vm1, %v561_v12  ;;  %v392_v15 = vpack.c.bf16 %v218_v14, %v217_v13  ;;  %v121_v17 = vand.u32 127, %v120_v16  ;;  %v123_v18 = vshrl.u32 %v120_v16, 7  ;;  %v219_v37 = vld [vmem:[#allocation8 + $0x10] sm:$0xff]  ;;  %v220_v38 = vld [vmem:[#allocation8 + $0x18] sm:$0xff]  ;;  %v359_v45 = vld [vmem:[#allocation10] ss:$0 sm:$0xff] }
  0x5f   :  { %vm131_vm2 = vcmask 130112   ;;  %vm142_vm3 = vcmask 1041409   ;;  %v395_v39 = vpack.c.bf16 %v220_v38, %v219_v37  ;;  %v357_v40 = vld [vmem:[#allocation7] ss:$0 sm:$0xff]  ;;  %vm228_vm4 = vcmask 261120   ;;  %s562_s4 = smov [#allocation11]  }
  0x60   :  { %390 = vmatpush3.bf16.msra.mxu0 %v389_v10  ;;  %393 = vmatpush3.bf16.msra.mxu1 %v392_v15  ;;  %v126_v19 = vadd.s32 4294967288, %v121_v17  ;;  %v124_v22 = vsub.s32 %v121_v17, %v123_v18  ;;  %v310_v52 = vsub.s32 0, %v123_v18  ;;  %v321_v55 = vsub.s32 1, %v123_v18  ;;  %s343_s3 = sshll.u32 %s562_s4, 4  ;;  %s344_s3 = int_to_ptr.vmem [resolvable:$true] %s343_s3 }
  0x61   :  { %100 = vadd.xlane.f32.xlu1 %v99_v6  ;;  %94 = vadd.xlane.f32.xlu0 %v93_v7  ;;  %s522_s21 = scalar_lea.vmem %s344_s3, 512  ;;  %p527_p13 = scmp.lt.s32.totalorder %s344_s3, %s344_s3 }
  0x62   :  { %394 = vmatprep.subr.bf16.mxu1 %v559_v11  ;;  %v129_v25 = vsub.s32 %v126_v19, %v123_v18  ;;  %p523_p12 = scmp.ne.s32.totalorder %s344_s3, %s522_s21  ;;  %p528_p0 = scmp.lt.s32.totalorder %s522_s21, %s522_s21 }
  0x64   :  { %396 = vmatpush3.bf16.msra.mxu1 %v395_v39  ;;  %p529_p1 = por %p528_p0, %p527_p13 }
  0x66   :  { %p530_p2 = pnand %p529_p1, %p523_p12 }
  0xea   :  { %v98_v20 = vpop.xlane.xlu1 %97  ;;  %v92_v21 = vpop.xlane.xlu0 %91 }
  0xeb   :  { %v105_v23 = vmul.f32 0.0625, %v98_v20  ;;  %v103_v24 = vmul.f32 0.0625, %v92_v21 }
  0xed   :  { %v136_v30 = vrot.slane %v105_v23, %v124_v22  ;;  %v125_v31 = vrot.slane %v103_v24, %v124_v22 }
  0xee   :  { %v101_v26 = vpop.xlane.xlu1 %100  ;;  %v95_v27 = vpop.xlane.xlu0 %94 }
  0xef   :  { %v106_v28 = vmul.f32 0.0625, %v101_v26  ;;  %v104_v29 = vmul.f32 0.0625, %v95_v27 }
  0xf1   :  { %v140_v32 = vrot.slane %v106_v28, %v129_v25  ;;  %v130_v33 = vrot.slane %v104_v29, %v129_v25 }
  0xf3   :  { %v132_v34 = vsel %vm131_vm2, %v130_v33, %v125_v31  ;;  %v141_v35 = vsel %vm131_vm2, %v140_v32, %v136_v30 }
  0xf4   :  { %v143_v36 = vsel %vm142_vm3, %v141_v35, %v132_v34 }
  0xf5   :  { %375 = vmatmul.mubr.msk.f32.vlgmr.msra.gmra.mrb[0].mxu0 %vm89_vm0, %v143_v36 }
 0x1c8   :  { %v212_v41 = vpop.f32.mrb[0].mxu0 }
 0x1c9   :  { %v213_v42 = vadd.f32 %v357_v40, %v212_v41  ;;  %v376_v43 = vpop.f32.mrb[1].mxu0 }
 0x1cb   :  { %v216_v44 = vmax.f32 %v213_v42, 0.0 }
 0x1cd   :  { %386 = vmatmul.mubr.msk.f32.vlgmr.msra.gmra.mrb[0].mxu1 %vm228_vm4, %v216_v44 }
 0x2a0   :  { %v298_v46 = vpop.f32.mrb[0].mxu1 }
 0x2a1   :  { %v299_v47 = vadd.f32 %v359_v45, %v298_v46  ;;  %v387_v48 = vpop.f32.mrb[1].mxu1 }
 0x2a3   :  { %v361_v49 = vmul.f32 -1.442695, %v299_v47 }
 0x2a5   :  { %408 = vpow2.f32 %v361_v49 }
 0x2af   :  { %v409_v50 = vpop.eup %408 }
 0x2b0   :  { %v305_v51 = vadd.f32 1.0, %v409_v50 }
 0x2b2   :  { %410 = vrcp.f32 %v305_v51 }
 0x2bc   :  { %v411_v53 = vpop.eup %410 }
 0x2bd   :  { %v311_v54 = vrot.slane %v411_v53, %v310_v52  ;;  %v322_v56 = vrot.slane %v411_v53, %v321_v55 }
 0x2bf   :  { %317 = vbcast.lane.b32.xlu1 %v311_v54, 264  ;;  %313 = vbcast.lane.b32.xlu0 %v311_v54, 256 }
 0x2c3   :  { %324 = vbcast.lane.b32.xlu1 %v322_v56, 256 }
 0x2c7   :  { %328 = vbcast.lane.b32.xlu1 %v322_v56, 264 }
 0x331   :  { %v318_v57 = vpop.permute.xlu1 %317  ;;  %v314_v58 = vpop.permute.xlu0 %313 }
 0x332   :  { %v331_v59 = vmul.f32 %v318_v57, %v679_v5  ;;  %v330_v60 = vmul.f32 %v314_v58, %v671_v1 }
 0x334   :  { %335 = vst.msk [vmem:[#allocation11 + $0x8] sm:$0xff] %vm89_vm0, %v331_v59  ;;  %334 = vst.msk [vmem:[#allocation11] sm:$0xff] %vm89_vm0, %v330_v60 }
 0x335   :  { %v325_v61 = vpop.permute.xlu1 %324 }
 0x336   :  { %v332_v62 = vmul.f32 %v325_v61, %v669_v0 }
 0x338   :  { %336 = vst.msk [vmem:[#allocation11 + $0x10] sm:$0xff] %vm89_vm0, %v332_v62 }
 0x339   :  { %v329_v63 = vpop.permute.xlu1 %328 }
 0x33a   :  { %v333_v3 = vmul.f32 %v329_v63, %v673_v2 }
 0x33c   :  { %337 = vst.msk [vmem:[#allocation11 + $0x18] sm:$0xff] %vm89_vm0, %v333_v3 }
 0x33d   :  { %533 = shalt.err (!%p530_p2)
}
 0x33e   :  { %s534_s9 = scalar_lea.hbm %s714_s5, 512 }
 0x33f   :  { %p535_p3 = scmp.ne.s32.totalorder %s714_s5, %s534_s9  ;;  %p538_p4 = scmp.lt.u32.totalorder %s534_s9, %s714_s5 }
 0x341   :  { %p540_p5 = pnand %p538_p4, %p535_p3 }
 0x343   :  { %543 = shalt.err (!%p540_p5)
}
 0x344   :  { %349 = dma.vmem_to_hbm [thread:$0]  %s344_s3, 512, %s714_s5, [#allocation4], %s554_s30, %s554_s30, %s555_s6  }
 0x345   :  { %550 = dma.done.wait [#allocation4], 512  }
 0x346   :  { %551 = vsyncadd [#allocation4], 4294966784 }
 0x347   :  { %353 = vsyncpa [#allocation3], 1 }
 0x348   :  { %354 = vsyncpa [#allocation6], 1 }
 0x349   :  { %355 = vsyncpa [#allocation9], 1 }
 0x34a   :  { %356 = vsyncpa [#allocation4], 1 }

</bundles_post_ra>
